<compile_context>
chip_gen: v5e
topology: v5e:2x2
jax: 0.10.0
libtpu: 0.0.40
codegen_flags: <defaults>
</compile_context>

<pallas_src>
import jax
import jax.numpy as jnp
from jax.experimental import pallas as pl
from jax.experimental.pallas import tpu as pltpu


def _copy_kernel(x_ref, o_ref):
    # Identity copy of one lane-dense block.
    o_ref[...] = x_ref[...]


_LANE_CAP = 8192                 # max lane width per block (multiple of 128)
_TARGET_BLOCK_BYTES = 4 << 20    # ~4 MiB blocks -> ~16 MiB live w/ 2x buffering


def _largest_lane_divisor(total, cap=_LANE_CAP):
    """Largest multiple of 128 that divides `total` (0 if none), capped."""
    best = 0
    c = 128
    limit = min(cap, total)
    while c <= limit:
        if total % c == 0:
            best = c
        c += 128
    return best


def _pick_blocks(rows, cols, itemsize):
    # Lane (last-dim) block: full dim if it fits, else a big multiple of 128.
    if cols <= _LANE_CAP:
        fc = cols                          # block == full dim -> always legal
    else:
        fc = _LANE_CAP                     # multiple of 128; ragged tail masked
    # Sublane (row) block: fill ~_TARGET_BLOCK_BYTES per block.
    bytes_per_row = max(fc * itemsize, 1)
    rows_target = max(8, _TARGET_BLOCK_BYTES // bytes_per_row)
    if rows <= rows_target:
        rb = rows                          # block == full dim -> always legal
    else:
        rb = max(8, (rows_target // 8) * 8)  # multiple of 8 sublanes
    return rb, fc


def _tiled_copy_2d(x2d):
    """Identity copy of a 2-D array with big, lane-dense blocks."""
    rows, cols = x2d.shape
    itemsize = x2d.dtype.itemsize
    rb, fc = _pick_blocks(rows, cols, itemsize)
    grid = (pl.cdiv(rows, rb), pl.cdiv(cols, fc))
    return pl.pallas_call(
        _copy_kernel,
        out_shape=jax.ShapeDtypeStruct((rows, cols), x2d.dtype),
        grid_spec=pltpu.PrefetchScalarGridSpec(
            num_scalar_prefetch=0,
            grid=grid,
            in_specs=[pl.BlockSpec((rb, fc), lambda i, j: (i, j))],
            out_specs=pl.BlockSpec((rb, fc), lambda i, j: (i, j)),
        ),
        compiler_params=pltpu.CompilerParams(
            dimension_semantics=("parallel", "parallel"),
            vmem_limit_bytes=48 << 20,
        ),
        cost_estimate=pl.CostEstimate(
            flops=0,
            transcendentals=0,
            bytes_accessed=2 * rows * cols * itemsize,
        ),
    )(x2d)


def view_flatten(x):
    """Pallas equivalent of View.forward: x.view(x.shape[0], -1)."""
    B = x.shape[0]
    flat = 1
    for d in x.shape[1:]:
        flat *= d
    total = B * flat

    # Collapse to one fully packed slab: (rows, lane) with lane a multiple of
    # 128, decoupling tile shape from B and avoiding masked partial stores.
    lane = _largest_lane_divisor(total)
    if lane > 0:
        slab = x.reshape(total // lane, lane)   # metadata-only
        out = _tiled_copy_2d(slab)
        return out.reshape(B, flat)             # metadata-only

    # Fallback (element count not a multiple of 128): copy in (B, flat)
    # layout; ragged blocks handled correctly by Pallas masking.
    return _tiled_copy_2d(x.reshape(B, flat))


if __name__ == "__main__":
    key = jax.random.PRNGKey(0)
    # Small NCHW conv-feature-like input.
    B, C, H, W = 2, 4, 16, 16
    x = jax.random.normal(key, (B, C, H, W), dtype=jnp.float32)

    out = view_flatten(x)
    out = jax.block_until_ready(out)

    # Reference: torch's x.view(B, -1) == row-major reshape.
    ref = x.reshape(B, -1)
    assert out.shape == (B, C * H * W), f"bad shape {out.shape}"
    assert out.dtype == x.dtype
    assert jnp.array_equal(out, ref), "flatten mismatch vs reference"

    print("KERNEL_OK")
</pallas_src>

<mosaic_0001>
module attributes {stable_mosaic.version = 11 : i64} {
  func.func @_copy_kernel(%arg0: i32, %arg1: i32, %arg2: memref<1x2048xf32, #tpu.memory_space<vmem>>, %arg3: memref<1x2048xf32, #tpu.memory_space<vmem>>) attributes {dimension_semantics = [#tpu.dimension_semantics<parallel>, #tpu.dimension_semantics<parallel>], iteration_bounds = array<i64: 1, 1>, scalar_prefetch = 0 : i64, scratch_operands = 0 : i64, tpu.core_type = #tpu.core_type<tc>, window_params = [{transform_indices = @transform_0, window_bounds = array<i64: 1, 2048>}, {transform_indices = @transform_1, window_bounds = array<i64: 1, 2048>}]} {
    %c0 = arith.constant 0 : index
    %c0_0 = arith.constant 0 : index
    %0 = vector.load %arg2[%c0, %c0_0] : memref<1x2048xf32, #tpu.memory_space<vmem>>, vector<1x2048xf32>
    %c0_1 = arith.constant 0 : index
    %c0_2 = arith.constant 0 : index
    %1 = vector.load %arg3[%c0_1, %c0_2] : memref<1x2048xf32, #tpu.memory_space<vmem>>, vector<1x2048xf32>
    tpu.vector_store %arg3[%c0_1, %c0_2], %0 {strides = array<i32>} : memref<1x2048xf32, #tpu.memory_space<vmem>>, vector<1x2048xf32>,
    return
  }
  func.func @transform_0(%arg0: i32, %arg1: i32) -> (i32, i32) {
    %c0_i32 = arith.constant 0 : i32
    return %arg0, %arg1 : i32, i32
  }
  func.func @transform_1(%arg0: i32, %arg1: i32) -> (i32, i32) {
    %c0_i32 = arith.constant 0 : i32
    return %arg0, %arg1 : i32, i32
  }
}

</mosaic_0001>

<bundles_post_ra>
// kernel: tpu_custom_call.1
= control target key start
LH: loop header
LB: loop body
LE: loop exit
PB: predicated region body
PF: predicated region fallthrough
CT: control target
= control target key end

     0   :  { %6 = vsyncpa [#allocation3], 0  ;;  %s116_s0 = inlined_call_operand.hbm [shape: f32[1,2048], index: 0, kind: input, shape index: {}]   ;;  %s117_s1 = inlined_call_operand.hbm [shape: f32[1,2048], index: 1, kind: output, shape index: {}]  }
   0x1   :  { %7 = vsyncpa [#allocation4], 0  ;;  %s13_s8 = sshll.u32 %s116_s0, 4  ;;  %s98_s9 = smov [#allocation2]   ;;  %s14_s8 = int_to_ptr.hbm [resolvable:$true] %s13_s8 }
   0x2   :  { %s15_s10 = sshll.u32 %s98_s9, 4  ;;  %s16_s10 = int_to_ptr.vmem [resolvable:$true] %s15_s10 }
   0x3   :  { %18 = dma.hbm_to_vmem [thread:$0]  %s14_s8, 256, %s16_s10, [#allocation3]  }
   0x4   :  { %94 = dma.done.wait [#allocation3], 256  }
   0x5   :  { %95 = vsyncadd [#allocation3], 4294967040  ;;  %s99_s11 = smov [#allocation5]   ;;  %s34_s15 = sshll.u32 %s117_s1, 4  ;;  %v23_v0 = vld [vmem:[#allocation2] sm:$0xff]  ;;  %v24_v1 = vld [vmem:[#allocation2 + $0x8] sm:$0xff]  ;;  %s35_s15 = int_to_ptr.hbm [resolvable:$true] %s34_s15 }
   0x6   :  { %s32_s12 = sshll.u32 %s99_s11, 4  ;;  %25 = vst [vmem:[#allocation5] sm:$0xff] %v23_v0  ;;  %s33_s12 = int_to_ptr.vmem [resolvable:$true] %s32_s12 }
   0x7   :  { %26 = vst [vmem:[#allocation5 + $0x8] sm:$0xff] %v24_v1 }
   0x8   :  { %37 = dma.vmem_to_hbm [thread:$0]  %s33_s12, 256, %s35_s15, [#allocation4]  }
   0x9   :  { %96 = dma.done.wait [#allocation4], 256  }
   0xa   :  { %97 = vsyncadd [#allocation4], 4294967040 }
   0xb   :  { %42 = vsyncpa [#allocation3], 1 }
   0xc   :  { %43 = vsyncpa [#allocation4], 1 }

</bundles_post_ra>
